<compile_context>
chip_gen: v5e
topology: v5e:2x2
jax: 0.10.0
libtpu: 0.0.40
codegen_flags: <defaults>
</compile_context>

<pallas_src>
import functools

import jax
import jax.numpy as jnp
from jax.experimental import pallas as pl
from jax.experimental.pallas import tpu as pltpu


# ---------------------------------------------------------------------------
# Activations (PyTorch-default constants).
# ---------------------------------------------------------------------------
def _elu(x):
    # ELU, alpha=1.0. exp runs on the clamped (<=0) branch only, so there is
    # no inf transient.  (expm1 would match PyTorch bit-for-bit near 0; the
    # clamped exp-1 form is guaranteed to lower in Mosaic and differs by
    # <1e-7 abs, far below the bf16-operand noise floor.)
    return jnp.where(x > 0, x, jnp.exp(jnp.minimum(x, 0.0)) - 1.0)


def _selu(x):
    alpha = 1.6732632423543772848170429916717
    scale = 1.0507009873554804934193349852946
    return scale * jnp.where(x > 0, x,
                             alpha * (jnp.exp(jnp.minimum(x, 0.0)) - 1.0))


# ---------------------------------------------------------------------------
# Kernel: one batch tile through all six layers, weights VMEM-resident.
# ---------------------------------------------------------------------------
def _mlp_kernel(x_ref,
                w0_ref, b0_ref, w1_ref, b1_ref, w2_ref, b2_ref,
                w3_ref, b3_ref, w4_ref, b4_ref, w5_ref, b5_ref,
                o_ref, *, wide_act_dtype):
    f32 = jnp.float32
    x = x_ref[...].astype(jnp.bfloat16)

    # layer il (input -> 512), Sigmoid.  W0/b0 arrive pre-scaled by 0.5 and
    # W1/b1 absorb the outer 0.5/+0.5 of sigmoid(z) = 0.5*tanh(0.5*z)+0.5, so
    # the only element-wise op on the widest (TB, 512) activation is tanh
    # (bf16 on v6e/v7x halves the EUP pushes; f32 on v5e).
    h0 = jnp.dot(x, w0_ref[...], preferred_element_type=f32) + b0_ref[...]
    t0 = jnp.tanh(h0.astype(wide_act_dtype)).astype(jnp.bfloat16)

    # layer hl1 (512 -> 256), ReLU  (bias already includes the sigmoid fold).
    z1 = jnp.dot(t0, w1_ref[...], preferred_element_type=f32) + b1_ref[...]
    a1 = jnp.maximum(z1.astype(wide_act_dtype), 0.0).astype(jnp.bfloat16)

    # layer hl2 (256 -> 64), ELU  (narrow: f32 element-wise is cheap).
    z2 = jnp.dot(a1, w2_ref[...], preferred_element_type=f32) + b2_ref[...]
    a2 = _elu(z2).astype(jnp.bfloat16)

    # layer hl3 (64 -> 16), SELU.
    z3 = jnp.dot(a2, w3_ref[...], preferred_element_type=f32) + b3_ref[...]
    a3 = _selu(z3).astype(jnp.bfloat16)

    # layer hl4 (16 -> 16), ReLU.
    z4 = jnp.dot(a3, w4_ref[...], preferred_element_type=f32) + b4_ref[...]
    a4 = jnp.maximum(z4, 0.0).astype(jnp.bfloat16)

    # output layer ol (16 -> output_size), no activation.
    out = jnp.dot(a4, w5_ref[...], preferred_element_type=f32) + b5_ref[...]
    o_ref[...] = out.astype(o_ref.dtype)


# ---------------------------------------------------------------------------
# Wrapper helpers: generation profile, tile-count-first batch tiling.
# ---------------------------------------------------------------------------
def _cdiv(a, b):
    return -(-a // b)


def _round_up(x, m):
    return ((x + m - 1) // m) * m


def _device_profile():
    try:
        kind = jax.devices()[0].device_kind.lower()
    except Exception:
        kind = ""
    is_v7 = ("v7" in kind) or ("7x" in kind)
    is_v6 = "v6" in kind
    return {
        "is_v7": is_v7,
        # bf16 VPU/EUP only on v6e/v7x; everything else keeps f32 activation
        # math (always correct, just not the bf16 fast path).
        "wide_act_dtype": jnp.bfloat16 if (is_v6 or is_v7) else jnp.float32,
        # VMEM is not the limiter (~12-16 MiB live at TB=2048 incl. weights),
        # so the cap is the same everywhere; v7x's real constraint is grid
        # parity, handled in _choose_batch_tiling.
        "tb_cap": 2048,
        "vmem_limit": (32 if is_v7 else 64) * 1024 * 1024,
    }


def _choose_batch_tiling(batch, tb_cap, force_even_tiles):
    """Pick the tile COUNT first, then derive TB (pads <= 7 rows)."""
    num_tiles = max(1, _cdiv(batch, tb_cap))
    if force_even_tiles and batch > 512 and num_tiles % 2:
        num_tiles += 1           # v7x: even grid keeps both TensorCores busy
    tb = _round_up(_cdiv(batch, num_tiles), 8)
    return tb, num_tiles


# ---------------------------------------------------------------------------
# Forward pass.
# ---------------------------------------------------------------------------
def neural_net_forward(x, prepared_params):
    """x: (batch, input_size) f32; prepared_params from prepare_params()."""
    batch, input_size = x.shape
    out_features = prepared_params[-1][0].shape[1]

    prof = _device_profile()
    tb, num_tiles = _choose_batch_tiling(batch, prof["tb_cap"], prof["is_v7"])
    padded_batch = num_tiles * tb
    if padded_batch != batch:
        x = jnp.pad(x, ((0, padded_batch - batch), (0, 0)))

    flat_args = [x]
    in_specs = [pl.BlockSpec((tb, input_size), lambda i: (i, 0))]
    for w, b in prepared_params:
        flat_args += [w, b]
        # Constant block index -> weights/biases stay VMEM-resident across
        # all grid steps; only the batch tiles stream through the pipeline.
        in_specs.append(pl.BlockSpec(w.shape, lambda i: (0, 0)))
        in_specs.append(pl.BlockSpec(b.shape, lambda i: (0, 0)))

    kernel = functools.partial(_mlp_kernel,
                               wide_act_dtype=prof["wide_act_dtype"])

    # Output feature dim (e.g. 8) deliberately NOT padded to 128 lanes.
    out_shape = jax.ShapeDtypeStruct((padded_batch, out_features), jnp.float32)
    out_spec = pl.BlockSpec((tb, out_features), lambda i: (i, 0))

    # v7x: the batch tiles are fully independent, so ask for explicit
    # core-level sharding; fall back to plain PARALLEL if rejected.
    if prof["is_v7"] and num_tiles >= 2 and num_tiles % 2 == 0:
        semantics_options = ((pltpu.CORE_PARALLEL,), (pltpu.PARALLEL,))
    else:
        semantics_options = ((pltpu.PARALLEL,),)

    last_exc = None
    for sems in semantics_options:
        try:
            out = pl.pallas_call(
                kernel,
                out_shape=out_shape,
                grid=(num_tiles,),
                in_specs=in_specs,
                out_specs=out_spec,
                compiler_params=pltpu.CompilerParams(
                    dimension_semantics=sems,
                    vmem_limit_bytes=prof["vmem_limit"],
                ),
            )(*flat_args)
            return out[:batch]
        except Exception as exc:  # retry with safer dimension semantics
            last_exc = exc
    raise last_exc


# ---------------------------------------------------------------------------
# Params: init (nn.Linear-style), one-time kernel prep, pure-f32 reference.
# ---------------------------------------------------------------------------
def init_params(key, input_size, output_size):
    """Deterministic init mimicking nn.Linear's uniform(-1/sqrt(fan_in), +)."""
    sizes = [(input_size, 512), (512, 256), (256, 64), (64, 16), (16, 16),
             (16, output_size)]
    params = []
    for fan_in, fan_out in sizes:
        key, kw, kb = jax.random.split(key, 3)
        bound = 1.0 / jnp.sqrt(jnp.float32(fan_in))
        # stored already transposed: (in, out)
        w = jax.random.uniform(kw, (fan_in, fan_out), jnp.float32,
                               minval=-bound, maxval=bound)
        b = jax.random.uniform(kb, (1, fan_out), jnp.float32,
                               minval=-bound, maxval=bound)
        params.append((w, b))
    return params


def prepare_params(params):
    """One-time transform of f32 (in,out)/(1,out) params into kernel operands.

    * every transposed weight is cast to bf16 ONCE (MXU operand); biases f32.
    * the layer-0 sigmoid is constant-folded into tanh form:
          sigmoid(z) = 0.5*tanh(0.5*z) + 0.5
      - W0, b0 pre-scaled by 0.5 (kernel's layer-0 pre-activation is 0.5*z),
      - the outer 0.5*... + 0.5 absorbed into layer 1:
          a0 @ W1 + b1 == tanh(h0) @ (0.5*W1) + (b1 + 0.5*W1.sum(0))
      so the kernel's only element-wise op on the (TB,512) activation is tanh.
    """
    (w0, b0), (w1, b1) = params[0], params[1]
    prepped = [
        ((0.5 * w0).astype(jnp.bfloat16), 0.5 * b0),
        ((0.5 * w1).astype(jnp.bfloat16),
         b1 + 0.5 * jnp.sum(w1, axis=0, keepdims=True)),
    ]
    for w, b in params[2:]:
        prepped.append((w.astype(jnp.bfloat16), b))
    return prepped


def reference_forward(x, params):
    """Pure-f32 reference with true PyTorch forward semantics."""
    (w0, b0), (w1, b1), (w2, b2), (w3, b3), (w4, b4), (w5, b5) = params
    h = jax.nn.sigmoid(x @ w0 + b0)
    h = jnp.maximum(h @ w1 + b1, 0.0)
    h = _elu(h @ w2 + b2)
    h = _selu(h @ w3 + b3)
    h = jnp.maximum(h @ w4 + b4, 0.0)
    return h @ w5 + b5


if __name__ == "__main__":
    key = jax.random.PRNGKey(0)
    input_size = 32
    output_size = 8
    batch = 2   # correctness demo; the tiling/bf16 work targets large batches

    kx, kp = jax.random.split(key)
    x = jax.random.normal(kx, (batch, input_size), jnp.float32)
    params = init_params(kp, input_size, output_size)
    kernel_params = prepare_params(params)   # bf16 cast + sigmoid fold, once

    out = jax.block_until_ready(neural_net_forward(x, kernel_params))
    ref = reference_forward(x, params)        # true f32 nn.Linear semantics

    assert out.shape == (batch, output_size)
    err = float(jnp.max(jnp.abs(out - ref)))
    # Precision contract: bf16 MXU operands (+ bf16 wide activations on
    # v6e/v7x) with f32 accumulation vs. the pure-f32 reference.
    assert jnp.allclose(out, ref, atol=3e-2, rtol=3e-2), f"max abs err {err}"

    print("KERNEL_OK")
</pallas_src>

<mosaic_0001>
module attributes {stable_mosaic.version = 11 : i64} {
  func.func @_mlp_kernel(%arg0: i32, %arg1: memref<8x32xf32, #tpu.memory_space<vmem>>, %arg2: memref<32x512xbf16, #tpu.memory_space<vmem>>, %arg3: memref<1x512xf32, #tpu.memory_space<vmem>>, %arg4: memref<512x256xbf16, #tpu.memory_space<vmem>>, %arg5: memref<1x256xf32, #tpu.memory_space<vmem>>, %arg6: memref<256x64xbf16, #tpu.memory_space<vmem>>, %arg7: memref<1x64xf32, #tpu.memory_space<vmem>>, %arg8: memref<64x16xbf16, #tpu.memory_space<vmem>>, %arg9: memref<1x16xf32, #tpu.memory_space<vmem>>, %arg10: memref<16x16xbf16, #tpu.memory_space<vmem>>, %arg11: memref<1x16xf32, #tpu.memory_space<vmem>>, %arg12: memref<16x8xbf16, #tpu.memory_space<vmem>>, %arg13: memref<1x8xf32, #tpu.memory_space<vmem>>, %arg14: memref<8x8xf32, #tpu.memory_space<vmem>>) attributes {dimension_semantics = [#tpu.dimension_semantics<parallel>], iteration_bounds = array<i64: 1>, scalar_prefetch = 0 : i64, scratch_operands = 0 : i64, tpu.core_type = #tpu.core_type<tc>, window_params = [{transform_indices = @transform_0, window_bounds = array<i64: 8, 32>}, {pipeline_mode = #tpu.pipeline_mode<synchronous>, transform_indices = @transform_1, window_bounds = array<i64: 32, 512>}, {pipeline_mode = #tpu.pipeline_mode<synchronous>, transform_indices = @transform_2, window_bounds = array<i64: 1, 512>}, {pipeline_mode = #tpu.pipeline_mode<synchronous>, transform_indices = @transform_3, window_bounds = array<i64: 512, 256>}, {pipeline_mode = #tpu.pipeline_mode<synchronous>, transform_indices = @transform_4, window_bounds = array<i64: 1, 256>}, {pipeline_mode = #tpu.pipeline_mode<synchronous>, transform_indices = @transform_5, window_bounds = array<i64: 256, 64>}, {pipeline_mode = #tpu.pipeline_mode<synchronous>, transform_indices = @transform_6, window_bounds = array<i64: 1, 64>}, {pipeline_mode = #tpu.pipeline_mode<synchronous>, transform_indices = @transform_7, window_bounds = array<i64: 64, 16>}, {pipeline_mode = #tpu.pipeline_mode<synchronous>, transform_indices = @transform_8, window_bounds = array<i64: 1, 16>}, {pipeline_mode = #tpu.pipeline_mode<synchronous>, transform_indices = @transform_9, window_bounds = array<i64: 16, 16>}, {pipeline_mode = #tpu.pipeline_mode<synchronous>, transform_indices = @transform_10, window_bounds = array<i64: 1, 16>}, {pipeline_mode = #tpu.pipeline_mode<synchronous>, transform_indices = @transform_11, window_bounds = array<i64: 16, 8>}, {pipeline_mode = #tpu.pipeline_mode<synchronous>, transform_indices = @transform_12, window_bounds = array<i64: 1, 8>}, {transform_indices = @transform_13, window_bounds = array<i64: 8, 8>}]} {
    %c0 = arith.constant 0 : index
    %c0_0 = arith.constant 0 : index
    %0 = vector.load %arg1[%c0, %c0_0] : memref<8x32xf32, #tpu.memory_space<vmem>>, vector<8x32xf32>
    %1 = arith.truncf %0 : vector<8x32xf32> to vector<8x32xbf16>
    %c0_1 = arith.constant 0 : index
    %c0_2 = arith.constant 0 : index
    %2 = vector.load %arg2[%c0_1, %c0_2] : memref<32x512xbf16, #tpu.memory_space<vmem>>, vector<32x512xbf16>
    %cst = arith.constant dense<0.000000e+00> : vector<8x512xf32>
    %3 = tpu.matmul %1, %2, %cst {dimension_numbers = #tpu.dot_dimension_numbers<[1], [0], [0], [1], [0, 0, 1, 1], [], []>} : vector<8x32xbf16>, vector<32x512xbf16>, vector<8x512xf32> -> vector<8x512xf32>
    %c0_3 = arith.constant 0 : index
    %c0_4 = arith.constant 0 : index
    %4 = vector.load %arg3[%c0_3, %c0_4] : memref<1x512xf32, #tpu.memory_space<vmem>>, vector<1x512xf32>
    %5 = vector.broadcast %4 : vector<1x512xf32> to vector<8x512xf32>
    %6 = arith.addf %3, %5 : vector<8x512xf32>
    %7 = math.tanh %6 : vector<8x512xf32>
    %8 = arith.truncf %7 : vector<8x512xf32> to vector<8x512xbf16>
    %c0_5 = arith.constant 0 : index
    %c0_6 = arith.constant 0 : index
    %9 = vector.load %arg4[%c0_5, %c0_6] : memref<512x256xbf16, #tpu.memory_space<vmem>>, vector<512x256xbf16>
    %cst_7 = arith.constant dense<0.000000e+00> : vector<8x256xf32>
    %10 = tpu.matmul %8, %9, %cst_7 {dimension_numbers = #tpu.dot_dimension_numbers<[1], [0], [0], [1], [0, 0, 1, 1], [], []>} : vector<8x512xbf16>, vector<512x256xbf16>, vector<8x256xf32> -> vector<8x256xf32>
    %c0_8 = arith.constant 0 : index
    %c0_9 = arith.constant 0 : index
    %11 = vector.load %arg5[%c0_8, %c0_9] : memref<1x256xf32, #tpu.memory_space<vmem>>, vector<1x256xf32>
    %12 = vector.broadcast %11 : vector<1x256xf32> to vector<8x256xf32>
    %13 = arith.addf %10, %12 : vector<8x256xf32>
    %cst_10 = arith.constant 0.000000e+00 : f32
    %14 = vector.broadcast %cst_10 : f32 to vector<8x256xf32>
    %15 = arith.maximumf %13, %14 : vector<8x256xf32>
    %16 = arith.truncf %15 : vector<8x256xf32> to vector<8x256xbf16>
    %c0_11 = arith.constant 0 : index
    %c0_12 = arith.constant 0 : index
    %17 = vector.load %arg6[%c0_11, %c0_12] : memref<256x64xbf16, #tpu.memory_space<vmem>>, vector<256x64xbf16>
    %cst_13 = arith.constant dense<0.000000e+00> : vector<8x64xf32>
    %18 = tpu.matmul %16, %17, %cst_13 {dimension_numbers = #tpu.dot_dimension_numbers<[1], [0], [0], [1], [0, 0, 1, 1], [], []>} : vector<8x256xbf16>, vector<256x64xbf16>, vector<8x64xf32> -> vector<8x64xf32>
    %c0_14 = arith.constant 0 : index
    %c0_15 = arith.constant 0 : index
    %19 = vector.load %arg7[%c0_14, %c0_15] : memref<1x64xf32, #tpu.memory_space<vmem>>, vector<1x64xf32>
    %20 = vector.broadcast %19 : vector<1x64xf32> to vector<8x64xf32>
    %21 = arith.addf %18, %20 : vector<8x64xf32>
    %cst_16 = arith.constant 0.000000e+00 : f32
    %22 = vector.broadcast %cst_16 : f32 to vector<8x64xf32>
    %23 = arith.cmpf ogt, %21, %22 : vector<8x64xf32>
    %cst_17 = arith.constant 0.000000e+00 : f32
    %24 = vector.broadcast %cst_17 : f32 to vector<8x64xf32>
    %25 = arith.minimumf %21, %24 : vector<8x64xf32>
    %26 = math.exp %25 : vector<8x64xf32>
    %cst_18 = arith.constant 1.000000e+00 : f32
    %27 = vector.broadcast %cst_18 : f32 to vector<8x64xf32>
    %28 = arith.subf %26, %27 : vector<8x64xf32>
    %29 = arith.select %23, %21, %28 : vector<8x64xi1>, vector<8x64xf32>
    %30 = arith.truncf %29 : vector<8x64xf32> to vector<8x64xbf16>
    %c0_19 = arith.constant 0 : index
    %c0_20 = arith.constant 0 : index
    %31 = vector.load %arg8[%c0_19, %c0_20] : memref<64x16xbf16, #tpu.memory_space<vmem>>, vector<64x16xbf16>
    %cst_21 = arith.constant dense<0.000000e+00> : vector<8x16xf32>
    %32 = tpu.matmul %30, %31, %cst_21 {dimension_numbers = #tpu.dot_dimension_numbers<[1], [0], [0], [1], [0, 0, 1, 1], [], []>} : vector<8x64xbf16>, vector<64x16xbf16>, vector<8x16xf32> -> vector<8x16xf32>
    %c0_22 = arith.constant 0 : index
    %c0_23 = arith.constant 0 : index
    %33 = vector.load %arg9[%c0_22, %c0_23] : memref<1x16xf32, #tpu.memory_space<vmem>>, vector<1x16xf32>
    %34 = vector.broadcast %33 : vector<1x16xf32> to vector<8x16xf32>
    %35 = arith.addf %32, %34 : vector<8x16xf32>
    %cst_24 = arith.constant 0.000000e+00 : f32
    %36 = vector.broadcast %cst_24 : f32 to vector<8x16xf32>
    %37 = arith.cmpf ogt, %35, %36 : vector<8x16xf32>
    %cst_25 = arith.constant 0.000000e+00 : f32
    %38 = vector.broadcast %cst_25 : f32 to vector<8x16xf32>
    %39 = arith.minimumf %35, %38 : vector<8x16xf32>
    %40 = math.exp %39 : vector<8x16xf32>
    %cst_26 = arith.constant 1.000000e+00 : f32
    %41 = vector.broadcast %cst_26 : f32 to vector<8x16xf32>
    %42 = arith.subf %40, %41 : vector<8x16xf32>
    %cst_27 = arith.constant 1.67326319 : f32
    %43 = vector.broadcast %cst_27 : f32 to vector<8x16xf32>
    %44 = arith.mulf %43, %42 : vector<8x16xf32>
    %45 = arith.select %37, %35, %44 : vector<8x16xi1>, vector<8x16xf32>
    %cst_28 = arith.constant 1.05070102 : f32
    %46 = vector.broadcast %cst_28 : f32 to vector<8x16xf32>
    %47 = arith.mulf %46, %45 : vector<8x16xf32>
    %48 = arith.truncf %47 : vector<8x16xf32> to vector<8x16xbf16>
    %c0_29 = arith.constant 0 : index
    %c0_30 = arith.constant 0 : index
    %49 = vector.load %arg10[%c0_29, %c0_30] : memref<16x16xbf16, #tpu.memory_space<vmem>>, vector<16x16xbf16>
    %cst_31 = arith.constant dense<0.000000e+00> : vector<8x16xf32>
    %50 = tpu.matmul %48, %49, %cst_31 {dimension_numbers = #tpu.dot_dimension_numbers<[1], [0], [0], [1], [0, 0, 1, 1], [], []>} : vector<8x16xbf16>, vector<16x16xbf16>, vector<8x16xf32> -> vector<8x16xf32>
    %c0_32 = arith.constant 0 : index
    %c0_33 = arith.constant 0 : index
    %51 = vector.load %arg11[%c0_32, %c0_33] : memref<1x16xf32, #tpu.memory_space<vmem>>, vector<1x16xf32>
    %52 = vector.broadcast %51 : vector<1x16xf32> to vector<8x16xf32>
    %53 = arith.addf %50, %52 : vector<8x16xf32>
    %cst_34 = arith.constant 0.000000e+00 : f32
    %54 = vector.broadcast %cst_34 : f32 to vector<8x16xf32>
    %55 = arith.maximumf %53, %54 : vector<8x16xf32>
    %56 = arith.truncf %55 : vector<8x16xf32> to vector<8x16xbf16>
    %c0_35 = arith.constant 0 : index
    %c0_36 = arith.constant 0 : index
    %57 = vector.load %arg12[%c0_35, %c0_36] : memref<16x8xbf16, #tpu.memory_space<vmem>>, vector<16x8xbf16>
    %cst_37 = arith.constant dense<0.000000e+00> : vector<8x8xf32>
    %58 = tpu.matmul %56, %57, %cst_37 {dimension_numbers = #tpu.dot_dimension_numbers<[1], [0], [0], [1], [0, 0, 1, 1], [], []>} : vector<8x16xbf16>, vector<16x8xbf16>, vector<8x8xf32> -> vector<8x8xf32>
    %c0_38 = arith.constant 0 : index
    %c0_39 = arith.constant 0 : index
    %59 = vector.load %arg13[%c0_38, %c0_39] : memref<1x8xf32, #tpu.memory_space<vmem>>, vector<1x8xf32>
    %60 = vector.broadcast %59 : vector<1x8xf32> to vector<8x8xf32>
    %61 = arith.addf %58, %60 : vector<8x8xf32>
    %c0_40 = arith.constant 0 : index
    %c0_41 = arith.constant 0 : index
    %62 = vector.load %arg14[%c0_40, %c0_41] : memref<8x8xf32, #tpu.memory_space<vmem>>, vector<8x8xf32>
    tpu.vector_store %arg14[%c0_40, %c0_41], %61 {strides = array<i32>} : memref<8x8xf32, #tpu.memory_space<vmem>>, vector<8x8xf32>,
    return
  }
  func.func @transform_0(%arg0: i32) -> (i32, i32) {
    %c0_i32 = arith.constant 0 : i32
    %c0_i32_0 = arith.constant 0 : i32
    return %arg0, %c0_i32 : i32, i32
  }
  func.func @transform_1(%arg0: i32) -> (i32, i32) {
    %c0_i32 = arith.constant 0 : i32
    %c0_i32_0 = arith.constant 0 : i32
    %c0_i32_1 = arith.constant 0 : i32
    return %c0_i32, %c0_i32_0 : i32, i32
  }
  func.func @transform_2(%arg0: i32) -> (i32, i32) {
    %c0_i32 = arith.constant 0 : i32
    %c0_i32_0 = arith.constant 0 : i32
    %c0_i32_1 = arith.constant 0 : i32
    return %c0_i32, %c0_i32_0 : i32, i32
  }
  func.func @transform_3(%arg0: i32) -> (i32, i32) {
    %c0_i32 = arith.constant 0 : i32
    %c0_i32_0 = arith.constant 0 : i32
    %c0_i32_1 = arith.constant 0 : i32
    return %c0_i32, %c0_i32_0 : i32, i32
  }
  func.func @transform_4(%arg0: i32) -> (i32, i32) {
    %c0_i32 = arith.constant 0 : i32
    %c0_i32_0 = arith.constant 0 : i32
    %c0_i32_1 = arith.constant 0 : i32
    return %c0_i32, %c0_i32_0 : i32, i32
  }
  func.func @transform_5(%arg0: i32) -> (i32, i32) {
    %c0_i32 = arith.constant 0 : i32
    %c0_i32_0 = arith.constant 0 : i32
    %c0_i32_1 = arith.constant 0 : i32
    return %c0_i32, %c0_i32_0 : i32, i32
  }
  func.func @transform_6(%arg0: i32) -> (i32, i32) {
    %c0_i32 = arith.constant 0 : i32
    %c0_i32_0 = arith.constant 0 : i32
    %c0_i32_1 = arith.constant 0 : i32
    return %c0_i32, %c0_i32_0 : i32, i32
  }
  func.func @transform_7(%arg0: i32) -> (i32, i32) {
    %c0_i32 = arith.constant 0 : i32
    %c0_i32_0 = arith.constant 0 : i32
    %c0_i32_1 = arith.constant 0 : i32
    return %c0_i32, %c0_i32_0 : i32, i32
  }
  func.func @transform_8(%arg0: i32) -> (i32, i32) {
    %c0_i32 = arith.constant 0 : i32
    %c0_i32_0 = arith.constant 0 : i32
    %c0_i32_1 = arith.constant 0 : i32
    return %c0_i32, %c0_i32_0 : i32, i32
  }
  func.func @transform_9(%arg0: i32) -> (i32, i32) {
    %c0_i32 = arith.constant 0 : i32
    %c0_i32_0 = arith.constant 0 : i32
    %c0_i32_1 = arith.constant 0 : i32
    return %c0_i32, %c0_i32_0 : i32, i32
  }
  func.func @transform_10(%arg0: i32) -> (i32, i32) {
    %c0_i32 = arith.constant 0 : i32
    %c0_i32_0 = arith.constant 0 : i32
    %c0_i32_1 = arith.constant 0 : i32
    return %c0_i32, %c0_i32_0 : i32, i32
  }
  func.func @transform_11(%arg0: i32) -> (i32, i32) {
    %c0_i32 = arith.constant 0 : i32
    %c0_i32_0 = arith.constant 0 : i32
    %c0_i32_1 = arith.constant 0 : i32
    return %c0_i32, %c0_i32_0 : i32, i32
  }
  func.func @transform_12(%arg0: i32) -> (i32, i32) {
    %c0_i32 = arith.constant 0 : i32
    %c0_i32_0 = arith.constant 0 : i32
    %c0_i32_1 = arith.constant 0 : i32
    return %c0_i32, %c0_i32_0 : i32, i32
  }
  func.func @transform_13(%arg0: i32) -> (i32, i32) {
    %c0_i32 = arith.constant 0 : i32
    %c0_i32_0 = arith.constant 0 : i32
    return %arg0, %c0_i32 : i32, i32
  }
}

</mosaic_0001>

<bundles_post_ra>
// kernel: tpu_custom_call.1
= control target key start
LH: loop header
LB: loop body
LE: loop exit
PB: predicated region body
PF: predicated region fallthrough
CT: control target
= control target key end

     0   :  { %18 = vsyncpa [#allocation3], 0  ;;  %s1759_s0 = inlined_call_operand.vmem [shape: f32[8,32], index: 0, kind: input, shape index: {}]   ;;  %s1760_s1 = inlined_call_operand.vmem [shape: bf16[32,512], index: 1, kind: input, shape index: {}]   ;;  %s1761_s2 = inlined_call_operand.vmem [shape: f32[1,512], index: 2, kind: input, shape index: {}]   ;;  %s1762_s3 = inlined_call_operand.hbm [shape: bf16[512,256], index: 3, kind: input, shape index: {}]   ;;  %s1763_s4 = inlined_call_operand.vmem [shape: f32[1,256], index: 4, kind: input, shape index: {}]   ;;  %s1764_s5 = inlined_call_operand.vmem [shape: bf16[256,64], index: 5, kind: input, shape index: {}]   ;;  %s1765_s6 = inlined_call_operand.vmem [shape: f32[1,64], index: 6, kind: input, shape index: {}]   ;;  %s1766_s7 = inlined_call_operand.vmem [shape: bf16[64,16], index: 7, kind: input, shape index: {}]   ;;  %s1767_s8 = inlined_call_operand.vmem [shape: f32[1,16], index: 8, kind: input, shape index: {}]   ;;  %s1768_s9 = inlined_call_operand.vmem [shape: bf16[16,16], index: 9, kind: input, shape index: {}]   ;;  %s1769_s10 = inlined_call_operand.vmem [shape: f32[1,16], index: 10, kind: input, shape index: {}]   ;;  %s1770_s11 = inlined_call_operand.vmem [shape: bf16[16,8], index: 11, kind: input, shape index: {}]   ;;  %s1771_s12 = inlined_call_operand.vmem [shape: f32[1,8], index: 12, kind: input, shape index: {}]   ;;  %s1772_s13 = inlined_call_operand.hbm [shape: f32[8,8], index: 13, kind: output, shape index: {}]  }
   0x1   :  { %19 = vsyncpa [#allocation4], 0  ;;  %s30_s27 = sshll.u32 %s1762_s3, 4  ;;  %s1540_s28 = smov [#allocation2]   ;;  %s31_s27 = int_to_ptr.hbm [resolvable:$true] %s30_s27 }
   0x2   :  { %s32_s29 = sshll.u32 %s1540_s28, 4  ;;  %s1541_s30 = smov 128   ;;  %s33_s29 = int_to_ptr.vmem [resolvable:$true] %s32_s29 }
   0x3   :  { %s1542_s14 = smov 8  }
   0x4   :  { %38 = dma.hbm_to_vmem [thread:$0]  %s31_s27, 8192, %s33_s29, [#allocation3], %s1541_s30, %s1541_s30, %s1542_s14  }
   0x5   :  { %1536 = dma.done.wait [#allocation3], 8192  }
   0x6   :  { %1537 = vsyncadd [#allocation3], 4294959104  ;;  %v1007_v0 = vld [vmem:[%s1760_s1 + $0x20] sm:$0xf]  ;;  %v1380_v1 = vld [vmem:[%s1760_s1 + $0x2c] sm:$0xf0] }
   0x7   :  { %v1378_v2 = vld [vmem:[%s1760_s1 + $0x24] sm:$0xf]  ;;  %v1008_v3 = vor.u32 %v1380_v1, %v1007_v0  ;;  %v1009_v4 = vld [vmem:[%s1760_s1 + $0x30] sm:$0xf0]  ;;  %v1015_v5 = vld [vmem:[%s1760_s1 + $0x28] sm:$0xf] }
   0x8   :  { %v1381_v6 = vld [vmem:[%s1760_s1 + $0x34] sm:$0xf0]  ;;  %v1012_v7 = vor.u32 %v1378_v2, %v1009_v4  ;;  %v1379_v9 = vld [vmem:[%s1760_s1 + $0x2c] sm:$0xf]  ;;  %v1017_v10 = vld [vmem:[%s1760_s1 + $0x38] sm:$0xf0] }
   0x9   :  { %v1016_v8 = vor.u32 %v1381_v6, %v1015_v5  ;;  %v991_v11 = vld [vmem:[%s1760_s1] sm:$0xf]  ;;  %132 = vmatpush.bf16.msra.mxu0 %v1008_v3  ;;  %v1020_v12 = vor.u32 %v1379_v9, %v1017_v10  ;;  %v1376_v13 = vld [vmem:[%s1760_s1 + $0xc] sm:$0xf0]  ;;  %v1374_v14 = vld [vmem:[%s1760_s1 + $0x4] sm:$0xf] }
   0xa   :  { %v993_v15 = vld [vmem:[%s1760_s1 + $0x10] sm:$0xf0]  ;;  %145 = vmatpush.bf16.msra.mxu1 %v1012_v7  ;;  %v992_v16 = vor.u32 %v1376_v13, %v991_v11  ;;  %v999_v18 = vld [vmem:[%s1760_s1 + $0x8] sm:$0xf]  ;;  %v1377_v19 = vld [vmem:[%s1760_s1 + $0x14] sm:$0xf0] }
   0xb   :  { %158 = vmatpush.bf16.msra.mxu2 %v1016_v8  ;;  %v996_v17 = vor.u32 %v1374_v14, %v993_v15  ;;  %v1375_v20 = vld [vmem:[%s1760_s1 + $0xc] sm:$0xf]  ;;  %171 = vmatpush.bf16.msra.mxu3 %v1020_v12  ;;  %v1000_v21 = vor.u32 %v1377_v19, %v999_v18  ;;  %v1001_v22 = vld [vmem:[%s1760_s1 + $0x18] sm:$0xf0]  ;;  %v62_v23 = vld [vmem:[%s1759_s0] sm:$0xff]  ;;  %vm122_vm0 = vcmask 261120  }
   0xc   :  { %v1083_v24 = vld [vmem:[#allocation2 + $0x70] sm:$0xf]  ;;  %v1004_v25 = vor.u32 %v1375_v20, %v1001_v22  ;;  %v63_v26 = vpack.c.bf16 %v62_v23, %v62_v23  ;;  %v1397_v27 = vld [vmem:[#allocation2 + $0x74] sm:$0xf0]  ;;  %v1075_v32 = vld [vmem:[#allocation2 + $0x60] sm:$0xf] }
   0xd   :  { %v1147_v28 = vld [vmem:[#allocation2 + $0xf0] sm:$0xf]  ;;  %v1413_v29 = vld [vmem:[#allocation2 + $0xf4] sm:$0xf0]  ;;  %133 = vmatpush.bf16.msra.mxu0 %v992_v16  ;;  %v1084_v30 = vor.u32 %v1397_v27, %v1083_v24  ;;  %v1395_v33 = vld [vmem:[#allocation2 + $0x64] sm:$0xf0] }
   0xe   :  { %v1148_v31 = vor.u32 %v1413_v29, %v1147_v28  ;;  %v1139_v34 = vld [vmem:[#allocation2 + $0xe0] sm:$0xf]  ;;  %146 = vmatpush.bf16.msra.mxu1 %v996_v17  ;;  %v1411_v35 = vld [vmem:[#allocation2 + $0xe4] sm:$0xf0]  ;;  %v1211_v36 = vld [vmem:[#allocation2 + $0x170] sm:$0xf]  ;;  %v1076_v38 = vor.u32 %v1395_v33, %v1075_v32 }
   0xf   :  { %159 = vmatpush.bf16.msra.mxu2 %v1000_v21  ;;  %v1429_v37 = vld [vmem:[#allocation2 + $0x174] sm:$0xf0]  ;;  %172 = vmatpush.bf16.msra.mxu3 %v1004_v25  ;;  %v1275_v40 = vld [vmem:[#allocation2 + $0x1f0] sm:$0xf]  ;;  %v1140_v43 = vor.u32 %v1411_v35, %v1139_v34  ;;  %v1203_v48 = vld [vmem:[#allocation2 + $0x160] sm:$0xf] }
  0x10   :  { %v1212_v39 = vor.u32 %v1429_v37, %v1211_v36  ;;  %v1445_v41 = vld [vmem:[#allocation2 + $0x1f4] sm:$0xf0]  ;;  %v1067_v42 = vld [vmem:[#allocation2 + $0x50] sm:$0xf]  ;;  %1021 = vmatmul.msk.bf16.vlgmr.msra.gmra.mxu0 %vm122_vm0, %v63_v26  ;;  %v1427_v49 = vld [vmem:[#allocation2 + $0x164] sm:$0xf0] }
  0x11   :  { %576 = vmatpush.bf16.msrb.mxu0 %v1084_v30  ;;  %v1276_v44 = vor.u32 %v1445_v41, %v1275_v40  ;;  %v1393_v45 = vld [vmem:[#allocation2 + $0x54] sm:$0xf0]  ;;  %v1131_v46 = vld [vmem:[#allocation2 + $0xd0] sm:$0xf]  ;;  %1022 = vmatmul.msk.bf16.vlgmr.msra.gmra.mxu1 %vm122_vm0, %v63_v26  ;;  %v1267_v50 = vld [vmem:[#allocation2 + $0x1e0] sm:$0xf]  ;;  %v1204_v51 = vor.u32 %v1427_v49, %v1203_v48 }
  0x12   :  { %589 = vmatpush.bf16.msrb.mxu1 %v1148_v31  ;;  %v1409_v47 = vld [vmem:[#allocation2 + $0xd4] sm:$0xf0]  ;;  %1023 = vmatmul.msk.bf16.vlgmr.msra.gmra.mxu2 %vm122_vm0, %v63_v26  ;;  %v1443_v52 = vld [vmem:[#allocation2 + $0x1e4] sm:$0xf0]  ;;  %v1068_v53 = vor.u32 %v1393_v45, %v1067_v42  ;;  %v1059_v55 = vld [vmem:[#allocation2 + $0x40] sm:$0xf] }
  0x13   :  { %1024 = vmatmul.msk.bf16.vlgmr.msra.gmra.mxu3 %vm122_vm0, %v63_v26  ;;  %602 = vmatpush.bf16.msrb.mxu2 %v1212_v39  ;;  %v1268_v54 = vor.u32 %v1443_v52, %v1267_v50  ;;  %v1391_v56 = vld [vmem:[#allocation2 + $0x44] sm:$0xf0]  ;;  %v1195_v57 = vld [vmem:[#allocation2 + $0x150] sm:$0xf]  ;;  %v1132_v58 = vor.u32 %v1409_v47, %v1131_v46  ;;  %v1425_v59 = vld [vmem:[#allocation2 + $0x154] sm:$0xf0] }
  0x14   :  { %615 = vmatpush.bf16.msrb.mxu3 %v1276_v44  ;;  %v1259_v60 = vld [vmem:[#allocation2 + $0x1d0] sm:$0xf]  ;;  %v1441_v61 = vld [vmem:[#allocation2 + $0x1d4] sm:$0xf0]  ;;  %v1123_v62 = vld [vmem:[#allocation2 + $0xc0] sm:$0xf]  ;;  %v1196_v0 = vor.u32 %v1425_v59, %v1195_v57  ;;  %v1060_v1 = vor.u32 %v1391_v56, %v1059_v55 }
  0x15   :  { %577 = vmatpush.bf16.msrb.mxu0 %v1076_v38  ;;  %v1407_v63 = vld [vmem:[#allocation2 + $0xc4] sm:$0xf0]  ;;  %v1260_v2 = vor.u32 %v1441_v61, %v1259_v60  ;;  %v1051_v3 = vld [vmem:[#allocation2 + $0x30] sm:$0xf]  ;;  %v1187_v4 = vld [vmem:[#allocation2 + $0x140] sm:$0xf] }
  0x16   :  { %590 = vmatpush.bf16.msrb.mxu1 %v1140_v43  ;;  %v1423_v5 = vld [vmem:[#allocation2 + $0x144] sm:$0xf0]  ;;  %v1124_v6 = vor.u32 %v1407_v63, %v1123_v62  ;;  %v1389_v7 = vld [vmem:[#allocation2 + $0x34] sm:$0xf0]  ;;  %v1251_v8 = vld [vmem:[#allocation2 + $0x1c0] sm:$0xf] }
  0x17   :  { %603 = vmatpush.bf16.msrb.mxu2 %v1204_v51  ;;  %v1439_v9 = vld [vmem:[#allocation2 + $0x1c4] sm:$0xf0]  ;;  %v1115_v10 = vld [vmem:[#allocation2 + $0xb0] sm:$0xf]  ;;  %v1405_v11 = vld [vmem:[#allocation2 + $0xb4] sm:$0xf0]  ;;  %v1188_v12 = vor.u32 %v1423_v5, %v1187_v4  ;;  %v1052_v13 = vor.u32 %v1389_v7, %v1051_v3 }
  0x18   :  { %616 = vmatpush.bf16.msrb.mxu3 %v1268_v54  ;;  %v1252_v14 = vor.u32 %v1439_v9, %v1251_v8  ;;  %v1043_v15 = vld [vmem:[#allocation2 + $0x20] sm:$0xf]  ;;  %v1179_v16 = vld [vmem:[#allocation2 + $0x130] sm:$0xf]  ;;  %v1421_v17 = vld [vmem:[#allocation2 + $0x134] sm:$0xf0]  ;;  %v1116_v18 = vor.u32 %v1405_v11, %v1115_v10 }
  0x19   :  { %578 = vmatpush.bf16.msrb.mxu0 %v1068_v53  ;;  %v1387_v19 = vld [vmem:[#allocation2 + $0x24] sm:$0xf0]  ;;  %v1243_v20 = vld [vmem:[#allocation2 + $0x1b0] sm:$0xf]  ;;  %v1437_v21 = vld [vmem:[#allocation2 + $0x1b4] sm:$0xf0]  ;;  %v1180_v24 = vor.u32 %v1421_v17, %v1179_v16 }
  0x1a   :  { %591 = vmatpush.bf16.msrb.mxu1 %v1132_v58  ;;  %v1107_v22 = vld [vmem:[#allocation2 + $0xa0] sm:$0xf]  ;;  %v1403_v23 = vld [vmem:[#allocation2 + $0xa4] sm:$0xf0]  ;;  %v1035_v25 = vld [vmem:[#allocation2 + $0x10] sm:$0xf]  ;;  %v1044_v26 = vor.u32 %v1387_v19, %v1043_v15  ;;  %v1244_v27 = vor.u32 %v1437_v21, %v1243_v20 }
  0x1b   :  { %604 = vmatpush.bf16.msrb.mxu2 %v1196_v0  ;;  %v1385_v28 = vld [vmem:[#allocation2 + $0x14] sm:$0xf0]  ;;  %v1171_v29 = vld [vmem:[#allocation2 + $0x120] sm:$0xf]  ;;  %v1419_v30 = vld [vmem:[#allocation2 + $0x124] sm:$0xf0]  ;;  %v1108_v31 = vor.u32 %v1403_v23, %v1107_v22 }
  0x1c   :  { %617 = vmatpush.bf16.msrb.mxu3 %v1260_v2  ;;  %v1099_v32 = vld [vmem:[#allocation2 + $0x90] sm:$0xf]  ;;  %v1235_v33 = vld [vmem:[#allocation2 + $0x1a0] sm:$0xf]  ;;  %v1435_v34 = vld [vmem:[#allocation2 + $0x1a4] sm:$0xf0]  ;;  %v1172_v36 = vor.u32 %v1419_v30, %v1171_v29  ;;  %v1036_v38 = vor.u32 %v1385_v28, %v1035_v25 }
  0x1d   :  { %579 = vmatpush.bf16.msrb.mxu0 %v1060_v1  ;;  %v1401_v35 = vld [vmem:[#allocation2 + $0x94] sm:$0xf0]  ;;  %v1027_v37 = vld [vmem:[#allocation2] sm:$0xf]  ;;  %v1236_v39 = vor.u32 %v1435_v34, %v1235_v33  ;;  %v1383_v40 = vld [vmem:[#allocation2 + $0x4] sm:$0xf0] }
  0x1e   :  { %592 = vmatpush.bf16.msrb.mxu1 %v1124_v6  ;;  %v1163_v41 = vld [vmem:[#allocation2 + $0x110] sm:$0xf]  ;;  %v1417_v42 = vld [vmem:[#allocation2 + $0x114] sm:$0xf0]  ;;  %v1100_v43 = vor.u32 %v1401_v35, %v1099_v32  ;;  %v1091_v44 = vld [vmem:[#allocation2 + $0x80] sm:$0xf]  ;;  %v1028_v53 = vor.u32 %v1383_v40, %v1027_v37 }
  0x1f   :  { %605 = vmatpush.bf16.msrb.mxu2 %v1188_v12  ;;  %v1227_v45 = vld [vmem:[#allocation2 + $0x190] sm:$0xf]  ;;  %v1433_v46 = vld [vmem:[#allocation2 + $0x194] sm:$0xf0]  ;;  %v1399_v47 = vld [vmem:[#allocation2 + $0x84] sm:$0xf0]  ;;  %v1164_v52 = vor.u32 %v1417_v42, %v1163_v41 }
  0x20   :  { %618 = vmatpush.bf16.msrb.mxu3 %v1252_v14  ;;  %v1396_v48 = vld [vmem:[#allocation2 + $0x74] sm:$0xf]  ;;  %v1085_v49 = vld [vmem:[#allocation2 + $0x78] sm:$0xf0]  ;;  %v1228_v54 = vor.u32 %v1433_v46, %v1227_v45  ;;  %v1092_v55 = vor.u32 %v1399_v47, %v1091_v44  ;;  %v1394_v58 = vld [vmem:[#allocation2 + $0x64] sm:$0xf] }
  0x21   :  { %580 = vmatpush.bf16.msrb.mxu0 %v1052_v13  ;;  %v1412_v50 = vld [vmem:[#allocation2 + $0xf4] sm:$0xf]  ;;  %v1149_v51 = vld [vmem:[#allocation2 + $0xf8] sm:$0xf0]  ;;  %v1088_v56 = vor.u32 %v1396_v48, %v1085_v49  ;;  %v1077_v59 = vld [vmem:[#allocation2 + $0x68] sm:$0xf0] }
  0x22   :  { %593 = vmatpush.bf16.msrb.mxu1 %v1116_v18  ;;  %v1152_v57 = vor.u32 %v1412_v50, %v1149_v51  ;;  %v1410_v60 = vld [vmem:[#allocation2 + $0xe4] sm:$0xf]  ;;  %v1080_v61 = vor.u32 %v1394_v58, %v1077_v59  ;;  %v1141_v62 = vld [vmem:[#allocation2 + $0xe8] sm:$0xf0]  ;;  %v1155_v63 = vld [vmem:[#allocation2 + $0x100] sm:$0xf] }
  0x23   :  { %606 = vmatpush.bf16.msrb.mxu2 %v1180_v24  ;;  %v1144_v0 = vor.u32 %v1410_v60, %v1141_v62  ;;  %v1415_v1 = vld [vmem:[#allocation2 + $0x104] sm:$0xf0]  ;;  %v1219_v2 = vld [vmem:[#allocation2 + $0x180] sm:$0xf]  ;;  %v1428_v6 = vld [vmem:[#allocation2 + $0x174] sm:$0xf] }
  0x24   :  { %619 = vmatpush.bf16.msrb.mxu3 %v1244_v27  ;;  %v1431_v3 = vld [vmem:[#allocation2 + $0x184] sm:$0xf0]  ;;  %v1156_v4 = vor.u32 %v1415_v1, %v1155_v63  ;;  %v1213_v7 = vld [vmem:[#allocation2 + $0x178] sm:$0xf0]  ;;  %v1444_v8 = vld [vmem:[#allocation2 + $0x1f4] sm:$0xf] }
  0x25   :  { %581 = vmatpush.bf16.msrb.mxu0 %v1044_v26  ;;  %v1220_v5 = vor.u32 %v1431_v3, %v1219_v2  ;;  %v1216_v9 = vor.u32 %v1428_v6, %v1213_v7  ;;  %v1277_v10 = vld [vmem:[#allocation2 + $0x1f8] sm:$0xf0]  ;;  %v1392_v11 = vld [vmem:[#allocation2 + $0x54] sm:$0xf]  ;;  %v1426_v18 = vld [vmem:[#allocation2 + $0x164] sm:$0xf] }
  0x26   :  { %594 = vmatpush.bf16.msrb.mxu1 %v1108_v31  ;;  %v1069_v12 = vld [vmem:[#allocation2 + $0x58] sm:$0xf0]  ;;  %v1280_v13 = vor.u32 %v1444_v8, %v1277_v10  ;;  %v1408_v15 = vld [vmem:[#allocation2 + $0xd4] sm:$0xf]  ;;  %v1205_v19 = vld [vmem:[#allocation2 + $0x168] sm:$0xf0] }
  0x27   :  { %607 = vmatpush.bf16.msrb.mxu2 %v1172_v36  ;;  %v1072_v14 = vor.u32 %v1392_v11, %v1069_v12  ;;  %v1133_v16 = vld [vmem:[#allocation2 + $0xd8] sm:$0xf0]  ;;  %v1442_v20 = vld [vmem:[#allocation2 + $0x1e4] sm:$0xf]  ;;  %v1208_v21 = vor.u32 %v1426_v18, %v1205_v19  ;;  %v1269_v22 = vld [vmem:[#allocation2 + $0x1e8] sm:$0xf0] }
  0x28   :  { %620 = vmatpush.bf16.msrb.mxu3 %v1236_v39  ;;  %v1136_v17 = vor.u32 %v1408_v15, %v1133_v16  ;;  %v1272_v23 = vor.u32 %v1442_v20, %v1269_v22  ;;  %v1390_v24 = vld [vmem:[#allocation2 + $0x44] sm:$0xf]  ;;  %v1061_v25 = vld [vmem:[#allocation2 + $0x48] sm:$0xf0]  ;;  %v1424_v30 = vld [vmem:[#allocation2 + $0x154] sm:$0xf] }
  0x29   :  { %582 = vmatpush.bf16.msrb.mxu0 %v1036_v38  ;;  %v1406_v26 = vld [vmem:[#allocation2 + $0xc4] sm:$0xf]  ;;  %v1064_v27 = vor.u32 %v1390_v24, %v1061_v25  ;;  %v1125_v28 = vld [vmem:[#allocation2 + $0xc8] sm:$0xf0]  ;;  %v1197_v31 = vld [vmem:[#allocation2 + $0x158] sm:$0xf0] }
  0x2a   :  { %595 = vmatpush.bf16.msrb.mxu1 %v1100_v43  ;;  %v1128_v29 = vor.u32 %v1406_v26, %v1125_v28  ;;  %v1440_v32 = vld [vmem:[#allocation2 + $0x1d4] sm:$0xf]  ;;  %v1200_v33 = vor.u32 %v1424_v30, %v1197_v31  ;;  %v1261_v34 = vld [vmem:[#allocation2 + $0x1d8] sm:$0xf0]  ;;  %v1422_v42 = vld [vmem:[#allocation2 + $0x144] sm:$0xf] }
  0x2b   :  { %608 = vmatpush.bf16.msrb.mxu2 %v1164_v52  ;;  %v1264_v35 = vor.u32 %v1440_v32, %v1261_v34  ;;  %v1388_v36 = vld [vmem:[#allocation2 + $0x34] sm:$0xf]  ;;  %v1053_v37 = vld [vmem:[#allocation2 + $0x38] sm:$0xf0]  ;;  %v1189_v43 = vld [vmem:[#allocation2 + $0x148] sm:$0xf0] }
  0x2c   :  { %621 = vmatpush.bf16.msrb.mxu3 %v1228_v54  ;;  %v1404_v38 = vld [vmem:[#allocation2 + $0xb4] sm:$0xf]  ;;  %v1056_v39 = vor.u32 %v1388_v36, %v1053_v37  ;;  %v1117_v40 = vld [vmem:[#allocation2 + $0xb8] sm:$0xf0]  ;;  %v1438_v44 = vld [vmem:[#allocation2 + $0x1c4] sm:$0xf]  ;;  %v1192_v45 = vor.u32 %v1422_v42, %v1189_v43 }
  0x2d   :  { %583 = vmatpush.bf16.msrb.mxu0 %v1028_v53  ;;  %v1120_v41 = vor.u32 %v1404_v38, %v1117_v40  ;;  %v1253_v46 = vld [vmem:[#allocation2 + $0x1c8] sm:$0xf0]  ;;  %v1386_v48 = vld [vmem:[#allocation2 + $0x24] sm:$0xf]  ;;  %v1420_v54 = vld [vmem:[#allocation2 + $0x134] sm:$0xf] }
  0x2e   :  { %596 = vmatpush.bf16.msrb.mxu1 %v1092_v55  ;;  %v1256_v47 = vor.u32 %v1438_v44, %v1253_v46  ;;  %v1045_v49 = vld [vmem:[#allocation2 + $0x28] sm:$0xf0]  ;;  %v1402_v50 = vld [vmem:[#allocation2 + $0xa4] sm:$0xf]  ;;  %v1181_v55 = vld [vmem:[#allocation2 + $0x138] sm:$0xf0] }
  0x2f   :  { %609 = vmatpush.bf16.msrb.mxu2 %v1156_v4  ;;  %v1048_v51 = vor.u32 %v1386_v48, %v1045_v49  ;;  %v1109_v52 = vld [vmem:[#allocation2 + $0xa8] sm:$0xf0]  ;;  %v1245_v58 = vld [vmem:[#allocation2 + $0x1b8] sm:$0xf0]  ;;  %v1384_v60 = vld [vmem:[#allocation2 + $0x14] sm:$0xf] }
  0x30   :  { %622 = vmatpush.bf16.msrb.mxu3 %v1220_v5  ;;  %v1112_v53 = vor.u32 %v1402_v50, %v1109_v52  ;;  %v1400_v62 = vld [vmem:[#allocation2 + $0x94] sm:$0xf]  ;;  %v1418_v1 = vld [vmem:[#allocation2 + $0x124] sm:$0xf]  ;;  %v1173_v2 = vld [vmem:[#allocation2 + $0x128] sm:$0xf0] }
  0x31   :  { %628 = vmatpush.bf16.msra.mxu0 %v1088_v56  ;;  %v1436_v56 = vld [vmem:[#allocation2 + $0x1b4] sm:$0xf]  ;;  %v1176_v4 = vor.u32 %v1418_v1, %v1173_v2  ;;  %v1434_v5 = vld [vmem:[#allocation2 + $0x1a4] sm:$0xf]  ;;  %v1237_v6 = vld [vmem:[#allocation2 + $0x1a8] sm:$0xf0] }
  0x32   :  { %641 = vmatpush.bf16.msra.mxu1 %v1152_v57  ;;  %v1184_v57 = vor.u32 %v1420_v54, %v1181_v55  ;;  %v1248_v59 = vor.u32 %v1436_v56, %v1245_v58  ;;  %v1382_v7 = vld [vmem:[#allocation2 + $0x4] sm:$0xf]  ;;  %v1240_v8 = vor.u32 %v1434_v5, %v1237_v6  ;;  %v1093_v11 = vld [vmem:[#allocation2 + $0x88] sm:$0xf0]  ;;  %v1165_v15 = vld [vmem:[#allocation2 + $0x118] sm:$0xf0] }
  0x33   :  { %654 = vmatpush.bf16.msra.mxu2 %v1216_v9  ;;  %v1029_v9 = vld [vmem:[#allocation2 + $0x8] sm:$0xf0]  ;;  %v1398_v10 = vld [vmem:[#allocation2 + $0x84] sm:$0xf]  ;;  %v1432_v16 = vld [vmem:[#allocation2 + $0x194] sm:$0xf] }
  0x34   :  { %667 = vmatpush.bf16.msra.mxu3 %v1280_v13  ;;  %v1032_v12 = vor.u32 %v1382_v7, %v1029_v9  ;;  %v1096_v13 = vor.u32 %v1398_v10, %v1093_v11  ;;  %v1229_v18 = vld [vmem:[#allocation2 + $0x198] sm:$0xf0]  ;;  %v1414_v22 = vld [vmem:[#allocation2 + $0x104] sm:$0xf]  ;;  %v1452_v46 = vld [vmem:[%s1764_s5 + $0x30] sm:$0xff]  ;;  %vm885_vm2 = vcmask 523264  }
  0x35   :  { %629 = vmatpush.bf16.msra.mxu0 %v1080_v61  ;;  %v1037_v61 = vld [vmem:[#allocation2 + $0x18] sm:$0xf0]  ;;  %v1232_v20 = vor.u32 %v1432_v16, %v1229_v18  ;;  %v1430_v24 = vld [vmem:[#allocation2 + $0x184] sm:$0xf]  ;;  %v1451_v52 = vld [vmem:[%s1764_s5 + $0x28] sm:$0xff]  ;;  %vm923_vm4 = vcmask 130048  }
  0x36   :  { %642 = vmatpush.bf16.msra.mxu1 %v1144_v0  ;;  %v1040_v63 = vor.u32 %v1384_v60, %v1037_v61  ;;  %v1101_v0 = vld [vmem:[#allocation2 + $0x98] sm:$0xf0]  ;;  %v1450_v54 = vld [vmem:[%s1764_s5 + $0x20] sm:$0xff]  ;;  %v1460_v58 = vld [vmem:[%s1764_s5 + $0x70] sm:$0xff]  ;;  %s1543_s17 = smov [#allocation5]   ;;  %s979_s3 = sshll.u32 %s1772_s13, 4  ;;  %s980_s3 = int_to_ptr.hbm [resolvable:$true] %s979_s3 }
  0x37   :  { %655 = vmatpush.bf16.msra.mxu2 %v1208_v21  ;;  %v1104_v3 = vor.u32 %v1400_v62, %v1101_v0  ;;  %v1453_v42 = vld [vmem:[%s1764_s5 + $0x38] sm:$0xff]  ;;  %v1459_v60 = vld [vmem:[%s1764_s5 + $0x68] sm:$0xff]  ;;  %v1446_v61 = vld [vmem:[%s1764_s5] sm:$0xff]  ;;  %s977_s18 = sshll.u32 %s1543_s17, 4  ;;  %vm970_vm5 = vcmask 64512   ;;  %s978_s18 = int_to_ptr.vmem [resolvable:$true] %s977_s18 }
  0x38   :  { %668 = vmatpush.bf16.msra.mxu3 %v1272_v23  ;;  %v1157_v23 = vld [vmem:[#allocation2 + $0x108] sm:$0xf0]  ;;  %v1461_v55 = vld [vmem:[%s1764_s5 + $0x78] sm:$0xff]  ;;  %v1458_v62 = vld [vmem:[%s1764_s5 + $0x60] sm:$0xff] }
  0x39   :  { %630 = vmatpush.bf16.msra.mxu0 %v1072_v14  ;;  %v1416_v14 = vld [vmem:[#allocation2 + $0x114] sm:$0xf]  ;;  %v1160_v26 = vor.u32 %v1414_v22, %v1157_v23  ;;  %v1449_v56 = vld [vmem:[%s1764_s5 + $0x18] sm:$0xff]  ;;  %v1455_v1 = vld [vmem:[%s1764_s5 + $0x48] sm:$0xff] }
  0x3a   :  { %643 = vmatpush.bf16.msra.mxu1 %v1136_v17  ;;  %v72_v17 = vld [vmem:[%s1761_s2] sm:$0xf]  ;;  %v1168_v19 = vor.u32 %v1416_v14, %v1165_v15  ;;  %v1456_v0 = vld [vmem:[%s1764_s5 + $0x50] sm:$0xff] }
  0x3b   :  { %656 = vmatpush.bf16.msra.mxu2 %v1200_v33  ;;  %v74_v21 = vperm.slane %v72_v17, 0  ;;  %v75_v25 = vperm.slane %v72_v17, 1  ;;  %v76_v33 = vperm.slane %v72_v17, 2  ;;  %v77_v34 = vperm.slane %v72_v17, 3  ;;  %v250_v2 = vld [vmem:[%s1763_s4] sm:$0x3] }
  0x3c   :  { %669 = vmatpush.bf16.msra.mxu3 %v1264_v35  ;;  %v252_v5 = vperm.slane %v250_v2, 0  ;;  %v1454_v6 = vld [vmem:[%s1764_s5 + $0x40] sm:$0xff] }
  0x3d   :  { %631 = vmatpush.bf16.msra.mxu0 %v1064_v27  ;;  %v1221_v27 = vld [vmem:[#allocation2 + $0x188] sm:$0xf0] }
  0x3e   :  { %644 = vmatpush.bf16.msra.mxu1 %v1128_v29  ;;  %v1224_v28 = vor.u32 %v1430_v24, %v1221_v27 }
  0x3f   :  { %657 = vmatpush.bf16.msra.mxu2 %v1192_v45 }
  0x40   :  { %670 = vmatpush.bf16.msra.mxu3 %v1256_v47 }
  0x41   :  { %632 = vmatpush.bf16.msra.mxu0 %v1056_v39 }
  0x42   :  { %645 = vmatpush.bf16.msra.mxu1 %v1120_v41 }
  0x43   :  { %658 = vmatpush.bf16.msra.mxu2 %v1184_v57  ;;  %v1448_v57 = vld [vmem:[%s1764_s5 + $0x10] sm:$0xff] }
  0x44   :  { %671 = vmatpush.bf16.msra.mxu3 %v1248_v59  ;;  %v1447_v59 = vld [vmem:[%s1764_s5 + $0x8] sm:$0xff] }
  0x45   :  { %633 = vmatpush.bf16.msra.mxu0 %v1048_v51 }
  0x46   :  { %646 = vmatpush.bf16.msra.mxu1 %v1112_v53 }
  0x47   :  { %659 = vmatpush.bf16.msra.mxu2 %v1176_v4 }
  0x48   :  { %672 = vmatpush.bf16.msra.mxu3 %v1240_v8 }
  0x49   :  { %634 = vmatpush.bf16.msra.mxu0 %v1040_v63  ;;  %v1457_v63 = vld [vmem:[%s1764_s5 + $0x58] sm:$0xff] }
  0x4a   :  { %647 = vmatpush.bf16.msra.mxu1 %v1104_v3 }
  0x4b   :  { %660 = vmatpush.bf16.msra.mxu2 %v1168_v19  ;;  %v253_v19 = vperm.slane %v250_v2, 1 }
  0x4c   :  { %673 = vmatpush.bf16.msra.mxu3 %v1232_v20 }
  0x4d   :  { %635 = vmatpush.bf16.msra.mxu0 %v1032_v12 }
  0x4e   :  { %648 = vmatpush.bf16.msra.mxu1 %v1096_v13 }
  0x4f   :  { %661 = vmatpush.bf16.msra.mxu2 %v1160_v26 }
  0x50   :  { %674 = vmatpush.bf16.msra.mxu3 %v1224_v28 }
  0x8d   :  { %v135_v29 = vpop.f32.mrf.mxu0 }
  0x8e   :  { %v136_v30 = vadd.f32 %v135_v29, %v74_v21  ;;  %v148_v31 = vpop.f32.mrf.mxu1 }
  0x8f   :  { %v149_v32 = vadd.f32 %v148_v31, %v75_v25 }
  0x90   :  { %1476 = vtanh.f32 %v136_v30 }
  0x91   :  { %1478 = vtanh.f32 %v149_v32 }
  0x95   :  { %v161_v35 = vpop.f32.mrf.mxu2  ;;  %v137_v38 = vpop.f32.mrf.mxu0 }
  0x96   :  { %v162_v36 = vadd.f32 %v161_v35, %v76_v33  ;;  %v174_v37 = vpop.f32.mrf.mxu3  ;;  %v1477_v39 = vpop.eup %1476  ;;  %v1464_v35 = vld [vmem:[%s1766_s7 + $0x10] sm:$0xff] }
  0x97   :  { %v175_v40 = vadd.f32 %v174_v37, %v77_v34  ;;  %v150_v41 = vpop.f32.mrf.mxu1  ;;  %v1479_v43 = vpop.eup %1478  ;;  %v182_v44 = vpack.c.bf16 %v1477_v39, %v1477_v39  ;;  %v1465_v34 = vld [vmem:[%s1766_s7 + $0x18] sm:$0xff]  ;;  %v1462_v37 = vld [vmem:[%s1766_s7] sm:$0xff] }
  0x98   :  { %1480 = vtanh.f32 %v162_v36  ;;  %v183_v45 = vpack.c.bf16 %v1479_v43, %v1479_v43  ;;  %v1463_v36 = vld [vmem:[%s1766_s7 + $0x8] sm:$0xff] }
  0x99   :  { %1482 = vtanh.f32 %v175_v40  ;;  %584 = vmatmul.bf16.vlgmr.msrb.gmra.mxu0 %v182_v44  ;;  %v1472_v40 = vld [vmem:[%s1765_s6] ss:$0 sm:$0xff] }
  0x9a   :  { %597 = vmatmul.bf16.vlgmr.msrb.gmra.mxu1 %v183_v45  ;;  %816 = vmatpush.bf16.msrb.mxu0 %v1453_v42 }
  0x9b   :  { %829 = vmatpush.bf16.msrb.mxu1 %v1461_v55 }
  0x9d   :  { %v163_v47 = vpop.f32.mrf.mxu2 }
  0x9e   :  { %v1481_v48 = vpop.eup %1480  ;;  %v176_v49 = vpop.f32.mrf.mxu3  ;;  %817 = vmatpush.bf16.msrb.mxu0 %v1452_v46 }
  0x9f   :  { %v1483_v50 = vpop.eup %1482  ;;  %v184_v51 = vpack.c.bf16 %v1481_v48, %v1481_v48  ;;  %830 = vmatpush.bf16.msrb.mxu1 %v1460_v58 }
  0xa0   :  { %v185_v53 = vpack.c.bf16 %v1483_v50, %v1483_v50 }
  0xa1   :  { %610 = vmatmul.bf16.vlgmr.msrb.gmra.mxu2 %v184_v51 }
  0xa2   :  { %623 = vmatmul.bf16.vlgmr.msrb.gmra.mxu3 %v185_v53  ;;  %818 = vmatpush.bf16.msrb.mxu0 %v1451_v52  ;;  %v1467_v52 = vld [vmem:[%s1770_s11] sm:$0xff] }
  0xa3   :  { %831 = vmatpush.bf16.msrb.mxu1 %v1459_v60  ;;  %893 = vmatpush.bf16.msrb.mxu2 %v1465_v34 }
  0xa6   :  { %819 = vmatpush.bf16.msrb.mxu0 %v1450_v54 }
  0xa7   :  { %832 = vmatpush.bf16.msrb.mxu1 %v1458_v62  ;;  %894 = vmatpush.bf16.msrb.mxu2 %v1464_v35 }
  0xa9   :  { %636 = vmatmul.bf16.vlgmr.msra.gmra.mxu0 %v182_v44 }
  0xaa   :  { %649 = vmatmul.bf16.vlgmr.msra.gmra.mxu1 %v183_v45  ;;  %820 = vmatpush.bf16.msrb.mxu0 %v1449_v56 }
  0xab   :  { %833 = vmatpush.bf16.msrb.mxu1 %v1457_v63  ;;  %895 = vmatpush.bf16.msrb.mxu2 %v1463_v36 }
  0xae   :  { %821 = vmatpush.bf16.msrb.mxu0 %v1448_v57 }
  0xaf   :  { %834 = vmatpush.bf16.msrb.mxu1 %v1456_v0  ;;  %896 = vmatpush.bf16.msrb.mxu2 %v1462_v37 }
  0xb1   :  { %662 = vmatmul.bf16.vlgmr.msra.gmra.mxu2 %v184_v51  ;;  %v1466_v51 = vld [vmem:[%s1768_s9] sm:$0xff] }
  0xb2   :  { %675 = vmatmul.bf16.vlgmr.msra.gmra.mxu3 %v185_v53  ;;  %822 = vmatpush.bf16.msrb.mxu0 %v1447_v59  ;;  %v1473_v53 = vld [vmem:[%s1767_s8] ss:$0 sm:$0xff] }
  0xb3   :  { %835 = vmatpush.bf16.msrb.mxu1 %v1455_v1  ;;  %934 = vmatpush.bf16.msrb.mxu3 %v1466_v51  ;;  %v1474_v1 = vld [vmem:[%s1769_s10] ss:$0 sm:$0xff] }
  0xb4   :  { %964 = vmatpush.bf16.msra.mxu2 %v1467_v52 }
  0xb6   :  { %823 = vmatpush.bf16.msrb.mxu0 %v1446_v61 }
  0xb7   :  { %836 = vmatpush.bf16.msrb.mxu1 %v1454_v6 }
 0x116   :  { %v585_v3 = vpop.f32.mrf.mxu0 }
 0x117   :  { %v598_v4 = vpop.f32.mrf.mxu1  ;;  %v586_v7 = vadd.f32 %v585_v3, %v252_v5 }
 0x119   :  { %v599_v10 = vadd.f32 %v598_v4, %v586_v7  ;;  %v1475_v7 = vld [vmem:[%s1771_s12] ss:$0 sm:$0xff] }
 0x11e   :  { %v587_v8 = vpop.f32.mrf.mxu0 }
 0x11f   :  { %v600_v9 = vpop.f32.mrf.mxu1 }
 0x124   :  { %v611_v11 = vpop.f32.mrf.mxu2 }
 0x125   :  { %v612_v12 = vadd.f32 %v611_v11, %v599_v10  ;;  %v624_v13 = vpop.f32.mrf.mxu3 }
 0x126   :  { %v637_v15 = vpop.f32.mrf.mxu0 }
 0x127   :  { %v625_v14 = vadd.f32 %v624_v13, %v612_v12  ;;  %v650_v16 = vpop.f32.mrf.mxu1  ;;  %v638_v22 = vadd.f32 %v637_v15, %v253_v19 }
 0x129   :  { %v680_v17 = vmax.f32 %v625_v14, 0.0  ;;  %v651_v25 = vadd.f32 %v650_v16, %v638_v22 }
 0x12b   :  { %v682_v18 = vpack.c.bf16 %v680_v17, %v680_v17 }
 0x12c   :  { %v613_v20 = vpop.f32.mrf.mxu2 }
 0x12d   :  { %v626_v21 = vpop.f32.mrf.mxu3  ;;  %824 = vmatmul.bf16.vlgmr.msrb.gmra.mxu0 %v682_v18 }
 0x12e   :  { %v639_v23 = vpop.f32.mrf.mxu0 }
 0x12f   :  { %v652_v24 = vpop.f32.mrf.mxu1 }
 0x134   :  { %v663_v26 = vpop.f32.mrf.mxu2 }
 0x135   :  { %v664_v27 = vadd.f32 %v663_v26, %v651_v25  ;;  %v676_v28 = vpop.f32.mrf.mxu3 }
 0x137   :  { %v677_v29 = vadd.f32 %v676_v28, %v664_v27 }
 0x139   :  { %v681_v30 = vmax.f32 %v677_v29, 0.0 }
 0x13b   :  { %v683_v31 = vpack.c.bf16 %v681_v30, %v681_v30 }
 0x13c   :  { %v665_v32 = vpop.f32.mrf.mxu2 }
 0x13d   :  { %v678_v33 = vpop.f32.mrf.mxu3  ;;  %837 = vmatmul.bf16.vlgmr.msrb.gmra.mxu1 %v683_v31 }
 0x1aa   :  { %v825_v38 = vpop.f32.mrf.mxu0 }
 0x1ab   :  { %v826_v41 = vadd.f32 %v1472_v40, %v825_v38 }
 0x1b2   :  { %v827_v39 = vpop.f32.mrf.mxu0 }
 0x1ba   :  { %v838_v42 = vpop.f32.mrf.mxu1 }
 0x1bb   :  { %v839_v43 = vadd.f32 %v838_v42, %v826_v41 }
 0x1bd   :  { %v843_v44 = vmin.f32 %v839_v43, 0.0  ;;  %vm842_vm1 = vcmp.gt.f32.partialorder %v839_v43, 0.0 }
 0x1bf   :  { %v844_v45 = vmul.f32 1.442695, %v843_v44 }
 0x1c1   :  { %1484 = vpow2.f32 %v844_v45 }
 0x1c2   :  { %v840_v46 = vpop.f32.mrf.mxu1 }
 0x1c7   :  { %v1485_v47 = vpop.eup %1484 }
 0x1c8   :  { %v1345_v48 = vadd.f32 -1.0, %v1485_v47 }
 0x1ca   :  { %v847_v49 = vsel %vm842_vm1, %v839_v43, %v1345_v48 }
 0x1cb   :  { %v848_v50 = vpack.c.bf16 %v847_v49, %v847_v49 }
 0x1cd   :  { %1362 = vmatmul.msk.bf16.vlgmr.msrb.gmra.mxu2 %vm885_vm2, %v848_v50 }
 0x250   :  { %v898_v54 = vpop.f32.mrf.mxu2 }
 0x251   :  { %v899_v55 = vadd.f32 %v1473_v53, %v898_v54 }
 0x253   :  { %v903_v56 = vmin.f32 %v899_v55, 0.0  ;;  %vm902_vm3 = vcmp.gt.f32.partialorder %v899_v55, 0.0 }
 0x255   :  { %v904_v57 = vmul.f32 1.442695, %v903_v56 }
 0x257   :  { %1486 = vpow2.f32 %v904_v57 }
 0x258   :  { %v900_v58 = vpop.f32.mrf.mxu2 }
 0x25d   :  { %v1487_v59 = vpop.eup %1486 }
 0x25e   :  { %v1363_v60 = vadd.f32 -1.0, %v1487_v59 }
 0x260   :  { %v907_v61 = vmul.f32 1.6732632, %v1363_v60 }
 0x262   :  { %v908_v62 = vsel %vm902_vm3, %v899_v55, %v907_v61 }
 0x263   :  { %v909_v63 = vmul.f32 1.050701, %v908_v62 }
 0x265   :  { %v910_v0 = vpack.c.bf16 %v909_v63, %v909_v63 }
 0x267   :  { %1368 = vmatmul.msk.bf16.vlgmr.msrb.gmra.mxu3 %vm923_vm4, %v910_v0 }
 0x2ea   :  { %v936_v2 = vpop.f32.mrf.mxu3 }
 0x2eb   :  { %v937_v3 = vadd.f32 %v1474_v1, %v936_v2 }
 0x2ed   :  { %v940_v4 = vmax.f32 %v937_v3, 0.0 }
 0x2ef   :  { %v941_v5 = vpack.c.bf16 %v940_v4, %v940_v4 }
 0x2f1   :  { %1373 = vmatmul.msk.bf16.vlgmr.msra.gmra.mxu2 %vm923_vm4, %v941_v5 }
 0x2f2   :  { %v938_v6 = vpop.f32.mrf.mxu3 }
 0x374   :  { %v966_v8 = vpop.f32.mrf.mxu2 }
 0x375   :  { %v967_v9 = vadd.f32 %v1475_v7, %v966_v8 }
 0x377   :  { %971 = vst.msk [vmem:[#allocation5] sm:$0xff] %vm970_vm5, %v967_v9 }
 0x378   :  { %982 = dma.vmem_to_hbm [thread:$0]  %s978_s18, 128, %s980_s3, [#allocation4]  }
 0x37c   :  { %v968_v10 = vpop.f32.mrf.mxu2 }
 0x37d   :  { %1538 = dma.done.wait [#allocation4], 128  }
 0x37e   :  { %1539 = vsyncadd [#allocation4], 4294967168 }
 0x37f   :  { %987 = vsyncpa [#allocation3], 1 }
 0x380   :  { %988 = vsyncpa [#allocation4], 1 }

</bundles_post_ra>
